<compile_context>
chip_gen: v6e
topology: v6e:2x2x1
jax: 0.10.0
libtpu: 0.0.40
codegen_flags: <defaults>
</compile_context>

<pallas_src>
import jax
import jax.numpy as jnp
from jax import lax
from jax.experimental import pallas as pl
from jax.experimental.pallas import tpu as pltpu


def embedding_kernel(x_ref, w1_ref, b1_ref, w2_ref, b2_ref, o_ref):
    # Cast x to bf16 in-kernel (x travels over HBM once, as the caller's f32).
    x_bf = x_ref[...].astype(jnp.bfloat16)
    # encoder: x @ W1 (bf16 operands, f32 accumulation), + b1, ReLU in f32
    h = jnp.dot(x_bf, w1_ref[...], preferred_element_type=jnp.float32)
    h = jnp.maximum(h + b1_ref[...], 0.0)
    # decoder: h @ W2 (cast activations back to bf16 for the MXU), + b2 in f32
    y = jnp.dot(h.astype(jnp.bfloat16), w2_ref[...],
                preferred_element_type=jnp.float32)
    y = y + b2_ref[...]
    # F.normalize(y, dim=-1): y / max(||y||, 1e-12)
    #   == y * rsqrt(max(||y||^2, 1e-24))   (sqrt is monotone -> identical clamp)
    norm_sq = jnp.sum(y * y, axis=-1, keepdims=True)
    o_ref[...] = (y * lax.rsqrt(jnp.maximum(norm_sq, 1e-24))).astype(o_ref.dtype)


def _round_up(n, m):
    return ((n + m - 1) // m) * m


def prepare_params(w1, b1, w2, b2):
    """One-time parameter prep (hoists dtype casts out of the per-call path).

    w1:(D_in,D_out), w2:(D_out,D_out) -> bf16 (MXU operands, resident in VMEM).
    b1,b2:(1,D_out) -> f32 (bias add / epilogue stay f32).
    """
    return (w1.astype(jnp.bfloat16), b1.astype(jnp.float32),
            w2.astype(jnp.bfloat16), b2.astype(jnp.float32))


def embedding_model(x, params, *, tile_b=2048, out_dtype=jnp.float32):
    """x:(B,D_in) f32; params = prepare_params(w1,b1,w2,b2)."""
    w1_bf, b1_f32, w2_bf, b2_f32 = params
    B, D_in = x.shape
    D_out = w2_bf.shape[1]

    # Batch tile:
    #  * big (default 2048) to amortize the ~0.35 us per-grid-step overhead,
    #  * but floor the grid at ~4 steps when B allows so the "parallel" axis
    #    spans both v7x TensorCores,
    #  * 16-row alignment (full sublane packing for the bf16 tiles in-kernel),
    #  * never larger than the (rounded-up) batch for tiny inputs.
    tb = max(16, min(tile_b, _round_up(pl.cdiv(B, 4), 16)))
    tb = min(tb, _round_up(B, 16))
    grid = (pl.cdiv(B, tb),)

    return pl.pallas_call(
        embedding_kernel,
        out_shape=jax.ShapeDtypeStruct((B, D_out), out_dtype),
        grid_spec=pltpu.PrefetchScalarGridSpec(
            num_scalar_prefetch=0,
            grid=grid,
            in_specs=[
                pl.BlockSpec((tb, D_in), lambda i: (i, 0)),      # x tile (f32; cast in-kernel)
                pl.BlockSpec((D_in, D_out), lambda i: (0, 0)),   # W1 (bf16, resident)
                pl.BlockSpec((1, D_out), lambda i: (0, 0)),      # b1 (f32)
                pl.BlockSpec((D_out, D_out), lambda i: (0, 0)),  # W2 (bf16, resident)
                pl.BlockSpec((1, D_out), lambda i: (0, 0)),      # b2 (f32)
            ],
            out_specs=pl.BlockSpec((tb, D_out), lambda i: (i, 0)),
        ),
        compiler_params=pltpu.CompilerParams(
            dimension_semantics=("parallel",),   # shards tiles across TCs on v7x
            vmem_limit_bytes=32 * 1024 * 1024,   # tb=2048 f32 x working set ~13 MB;
                                                 # clears v5e's 16 MiB scoped default,
                                                 # safe on v7x (64 MiB physical)
        ),
    )(x, w1_bf, b1_f32, w2_bf, b2_f32)


def reference_f32(x, w1, b1, w2, b2):
    h = jnp.maximum(x @ w1 + b1, 0.0)
    y = h @ w2 + b2
    norm = jnp.sqrt(jnp.sum(y * y, axis=-1, keepdims=True))
    return y / jnp.maximum(norm, 1e-12)


if __name__ == "__main__":
    input_size, output_size = 640, 128
    batch = 16  # small test batch; wrapper clamps the tile accordingly

    key = jax.random.PRNGKey(0)
    kx, k1, kb1, k2, kb2 = jax.random.split(key, 5)

    # Deterministic synthetic parameters (shapes match nn.Linear(640,128) and
    # nn.Linear(128,128); stored transposed as (in, out) for the kernel).
    x = jax.random.normal(kx, (batch, input_size), dtype=jnp.float32)
    w1 = jax.random.normal(k1, (input_size, output_size), dtype=jnp.float32) * 0.02
    b1 = jax.random.normal(kb1, (1, output_size), dtype=jnp.float32) * 0.02
    w2 = jax.random.normal(k2, (output_size, output_size), dtype=jnp.float32) * 0.02
    b2 = jax.random.normal(kb2, (1, output_size), dtype=jnp.float32) * 0.02

    params = prepare_params(w1, b1, w2, b2)  # one-time cast, outside hot path

    out = embedding_model(x, params)
    out = jax.block_until_ready(out)
    assert out.shape == (batch, output_size)

    # f32 reference with tolerance loosened for the bf16 matmul operands
    # (accumulation and the normalize epilogue are f32 in the kernel).
    ref = reference_f32(x, w1, b1, w2, b2)
    assert jnp.allclose(out, ref, atol=2e-2, rtol=2e-2), "mismatch vs f32 reference"

    # Tighter check against a reference that mirrors the kernel's bf16 casts.
    ref_bf = reference_f32(
        x.astype(jnp.bfloat16).astype(jnp.float32),
        w1.astype(jnp.bfloat16).astype(jnp.float32), b1,
        w2.astype(jnp.bfloat16).astype(jnp.float32), b2)
    assert jnp.allclose(out, ref_bf, atol=5e-3, rtol=5e-3), "mismatch vs bf16 reference"

    print("KERNEL_OK")
</pallas_src>

<mosaic_0001>
module attributes {stable_mosaic.version = 11 : i64} {
  func.func @embedding_kernel(%arg0: i32, %arg1: memref<16x640xf32, #tpu.memory_space<vmem>>, %arg2: memref<640x128xbf16, #tpu.memory_space<vmem>>, %arg3: memref<1x128xf32, #tpu.memory_space<vmem>>, %arg4: memref<128x128xbf16, #tpu.memory_space<vmem>>, %arg5: memref<1x128xf32, #tpu.memory_space<vmem>>, %arg6: memref<16x128xf32, #tpu.memory_space<vmem>>) attributes {dimension_semantics = [#tpu.dimension_semantics<parallel>], iteration_bounds = array<i64: 1>, scalar_prefetch = 0 : i64, scratch_operands = 0 : i64, tpu.core_type = #tpu.core_type<tc>, window_params = [{transform_indices = @transform_0, window_bounds = array<i64: 16, 640>}, {pipeline_mode = #tpu.pipeline_mode<synchronous>, transform_indices = @transform_1, window_bounds = array<i64: 640, 128>}, {pipeline_mode = #tpu.pipeline_mode<synchronous>, transform_indices = @transform_2, window_bounds = array<i64: 1, 128>}, {pipeline_mode = #tpu.pipeline_mode<synchronous>, transform_indices = @transform_3, window_bounds = array<i64: 128, 128>}, {pipeline_mode = #tpu.pipeline_mode<synchronous>, transform_indices = @transform_4, window_bounds = array<i64: 1, 128>}, {transform_indices = @transform_5, window_bounds = array<i64: 16, 128>}]} {
    %c0 = arith.constant 0 : index
    %c0_0 = arith.constant 0 : index
    %0 = vector.load %arg1[%c0, %c0_0] : memref<16x640xf32, #tpu.memory_space<vmem>>, vector<16x640xf32>
    %1 = arith.truncf %0 : vector<16x640xf32> to vector<16x640xbf16>
    %c0_1 = arith.constant 0 : index
    %c0_2 = arith.constant 0 : index
    %2 = vector.load %arg2[%c0_1, %c0_2] : memref<640x128xbf16, #tpu.memory_space<vmem>>, vector<640x128xbf16>
    %cst = arith.constant dense<0.000000e+00> : vector<16x128xf32>
    %3 = tpu.matmul %1, %2, %cst {dimension_numbers = #tpu.dot_dimension_numbers<[1], [0], [0], [1], [0, 0, 1, 1], [], []>} : vector<16x640xbf16>, vector<640x128xbf16>, vector<16x128xf32> -> vector<16x128xf32>
    %c0_3 = arith.constant 0 : index
    %c0_4 = arith.constant 0 : index
    %4 = vector.load %arg3[%c0_3, %c0_4] : memref<1x128xf32, #tpu.memory_space<vmem>>, vector<1x128xf32>
    %5 = vector.broadcast %4 : vector<1x128xf32> to vector<16x128xf32>
    %6 = arith.addf %3, %5 : vector<16x128xf32>
    %cst_5 = arith.constant 0.000000e+00 : f32
    %7 = vector.broadcast %cst_5 : f32 to vector<16x128xf32>
    %8 = arith.maximumf %6, %7 : vector<16x128xf32>
    %9 = arith.truncf %8 : vector<16x128xf32> to vector<16x128xbf16>
    %c0_6 = arith.constant 0 : index
    %c0_7 = arith.constant 0 : index
    %10 = vector.load %arg4[%c0_6, %c0_7] : memref<128x128xbf16, #tpu.memory_space<vmem>>, vector<128x128xbf16>
    %cst_8 = arith.constant dense<0.000000e+00> : vector<16x128xf32>
    %11 = tpu.matmul %9, %10, %cst_8 {dimension_numbers = #tpu.dot_dimension_numbers<[1], [0], [0], [1], [0, 0, 1, 1], [], []>} : vector<16x128xbf16>, vector<128x128xbf16>, vector<16x128xf32> -> vector<16x128xf32>
    %c0_9 = arith.constant 0 : index
    %c0_10 = arith.constant 0 : index
    %12 = vector.load %arg5[%c0_9, %c0_10] : memref<1x128xf32, #tpu.memory_space<vmem>>, vector<1x128xf32>
    %13 = vector.broadcast %12 : vector<1x128xf32> to vector<16x128xf32>
    %14 = arith.addf %11, %13 : vector<16x128xf32>
    %15 = arith.mulf %14, %14 : vector<16x128xf32>
    %cst_11 = arith.constant dense<0.000000e+00> : vector<16xf32>
    %16 = vector.multi_reduction <add>, %15, %cst_11 [1] : vector<16x128xf32> to vector<16xf32>
    %17 = vector.shape_cast %16 : vector<16xf32> to vector<16x1xf32>
    %cst_12 = arith.constant 1.000000e-24 : f32
    %18 = vector.broadcast %cst_12 : f32 to vector<16x1xf32>
    %19 = arith.maximumf %17, %18 : vector<16x1xf32>
    %20 = math.rsqrt %19 : vector<16x1xf32>
    %21 = vector.broadcast %20 : vector<16x1xf32> to vector<16x128xf32>
    %22 = arith.mulf %14, %21 : vector<16x128xf32>
    %c0_13 = arith.constant 0 : index
    %c0_14 = arith.constant 0 : index
    %23 = vector.load %arg6[%c0_13, %c0_14] : memref<16x128xf32, #tpu.memory_space<vmem>>, vector<16x128xf32>
    tpu.vector_store %arg6[%c0_13, %c0_14], %22 {strides = array<i32>} : memref<16x128xf32, #tpu.memory_space<vmem>>, vector<16x128xf32>,
    return
  }
  func.func @transform_0(%arg0: i32) -> (i32, i32) {
    %c0_i32 = arith.constant 0 : i32
    %c0_i32_0 = arith.constant 0 : i32
    return %arg0, %c0_i32 : i32, i32
  }
  func.func @transform_1(%arg0: i32) -> (i32, i32) {
    %c0_i32 = arith.constant 0 : i32
    %c0_i32_0 = arith.constant 0 : i32
    %c0_i32_1 = arith.constant 0 : i32
    return %c0_i32, %c0_i32_0 : i32, i32
  }
  func.func @transform_2(%arg0: i32) -> (i32, i32) {
    %c0_i32 = arith.constant 0 : i32
    %c0_i32_0 = arith.constant 0 : i32
    %c0_i32_1 = arith.constant 0 : i32
    return %c0_i32, %c0_i32_0 : i32, i32
  }
  func.func @transform_3(%arg0: i32) -> (i32, i32) {
    %c0_i32 = arith.constant 0 : i32
    %c0_i32_0 = arith.constant 0 : i32
    %c0_i32_1 = arith.constant 0 : i32
    return %c0_i32, %c0_i32_0 : i32, i32
  }
  func.func @transform_4(%arg0: i32) -> (i32, i32) {
    %c0_i32 = arith.constant 0 : i32
    %c0_i32_0 = arith.constant 0 : i32
    %c0_i32_1 = arith.constant 0 : i32
    return %c0_i32, %c0_i32_0 : i32, i32
  }
  func.func @transform_5(%arg0: i32) -> (i32, i32) {
    %c0_i32 = arith.constant 0 : i32
    %c0_i32_0 = arith.constant 0 : i32
    return %arg0, %c0_i32 : i32, i32
  }
}

</mosaic_0001>

<bundles_post_ra>
// kernel: tpu_custom_call.1
= control target key start
LH: loop header
LB: loop body
LE: loop exit
PB: predicated region body
PF: predicated region fallthrough
CT: control target
= control target key end

     0   :  { %10 = vsyncpa [#allocation3], 0  ;;  %s1055_s0 = inlined_call_operand.hbm [shape: f32[16,640], index: 0, kind: input, shape index: {}]   ;;  %s1056_s1 = inlined_call_operand.hbm [shape: bf16[640,128], index: 1, kind: input, shape index: {}]   ;;  %s1057_s2 = inlined_call_operand.vmem [shape: f32[1,128], index: 2, kind: input, shape index: {}]   ;;  %s1058_s3 = inlined_call_operand.hbm [shape: bf16[128,128], index: 3, kind: input, shape index: {}]   ;;  %s1059_s4 = inlined_call_operand.vmem [shape: f32[1,128], index: 4, kind: input, shape index: {}]   ;;  %s1060_s5 = inlined_call_operand.hbm [shape: f32[16,128], index: 5, kind: output, shape index: {}]  }
   0x1   :  { %11 = vsyncpa [#allocation6], 0 }
   0x2   :  { %12 = vsyncpa [#allocation4], 0  ;;  %s977_s18 = smov [#allocation5]  }
   0x3   :  { %s30_s19 = sshll.u32 %s977_s18, 4  ;;  %s31_s19 = int_to_ptr.vmem [resolvable:$true] %s30_s19 }
   0x4   :  { %s899_s20 = scalar_lea.vmem %s31_s19, 5120  ;;  %p904_p1 = scmp.lt.s32.totalorder %s31_s19, %s31_s19 }
   0x5   :  { %p900_p0 = scmp.ne.s32.totalorder %s31_s19, %s899_s20  ;;  %p905_p2 = scmp.lt.s32.totalorder %s899_s20, %s899_s20 }
   0x7   :  { %p906_p3 = por %p905_p2, %p904_p1 }
   0x9   :  { %p907_p4 = pnand %p906_p3, %p900_p0 }
   0xb   :  { %910 = shalt.err (!%p907_p4)
}
   0xc   :  { %s978_s21 = smov 64   ;;  %s979_s22 = smov 4  }
   0xd   :  { %36 = dma.hbm_to_vmem [thread:$0]  %s1056_s1, 5120, %s31_s19, [#allocation6], %s978_s21, %s978_s21, %s979_s22  }
   0xe   :  { %s980_s25 = smov [#allocation2]  }
   0xf   :  { %s18_s26 = sshll.u32 %s980_s25, 4  ;;  %s19_s26 = int_to_ptr.vmem [resolvable:$true] %s18_s26 }
  0x10   :  { %s919_s27 = scalar_lea.vmem %s19_s26, 1280  ;;  %p924_p6 = scmp.lt.s32.totalorder %s19_s26, %s19_s26 }
  0x11   :  { %p920_p5 = scmp.ne.s32.totalorder %s19_s26, %s919_s27  ;;  %p925_p7 = scmp.lt.s32.totalorder %s919_s27, %s919_s27 }
  0x13   :  { %p926_p8 = por %p925_p7, %p924_p6 }
  0x15   :  { %p927_p9 = pnand %p926_p8, %p920_p5 }
  0x17   :  { %930 = shalt.err (!%p927_p9)
}
  0x18   :  { %s981_s28 = smov 640   ;;  %s982_s29 = smov 40  }
  0x19   :  { %24 = dma.hbm_to_vmem [thread:$0]  %s1055_s0, 1280, %s19_s26, [#allocation3], %s981_s28, %s981_s28, %s982_s29  }
  0x1a   :  { %s983_s7 = smov [#allocation7]  }
  0x1b   :  { %s44_s8 = sshll.u32 %s983_s7, 4  ;;  %s45_s8 = int_to_ptr.vmem [resolvable:$true] %s44_s8 }
  0x1c   :  { %s939_s1 = scalar_lea.vmem %s45_s8, 1024  ;;  %p944_p11 = scmp.lt.s32.totalorder %s45_s8, %s45_s8 }
  0x1d   :  { %p940_p10 = scmp.ne.s32.totalorder %s45_s8, %s939_s1  ;;  %p945_p12 = scmp.lt.s32.totalorder %s939_s1, %s939_s1 }
  0x1f   :  { %p946_p13 = por %p945_p12, %p944_p11 }
  0x21   :  { %p947_p0 = pnand %p946_p13, %p940_p10 }
  0x23   :  { %950 = shalt.err (!%p947_p0)
}
  0x24   :  { %50 = dma.hbm_to_vmem [thread:$0]  %s1058_s3, 1024, %s45_s8, [#allocation6], %s978_s21, %s978_s21, %s979_s22  }
  0x25   :  { %971 = dma.done.wait [#allocation3], 1280  }
  0x26   :  { %972 = vsyncadd [#allocation3], 4294966016 }
  0x27   :  { %973 = dma.done.wait [#allocation6], 6144  }
  0x28   :  { %974 = vsyncadd [#allocation6], 4294961152  ;;  %v839_v0 = vld [vmem:[#allocation5 + $0x78] sm:$0xff]   ;;  %v843_v4 = vld [vmem:[#allocation5 + $0x70] sm:$0xff]   ;;  %v984_v36 = vmov 0.0   ;;  %vm985_vm0 = vmmov 0  }
  0x29   :  { %v840_v1 = vld [vmem:[#allocation5 + $0x38] sm:$0xff]   ;;  %725 = vmatprep.subr.bf16.mxu0 %v839_v0  ;;  %v844_v5 = vld [vmem:[#allocation5 + $0x30] sm:$0xff]   ;;  %v847_v8 = vld [vmem:[#allocation5 + $0x68] sm:$0xff]   ;;  %s986_s12 = smov [#allocation8]  }
  0x2a   :  { %v841_v2 = vld [vmem:[#allocation5 + $0xf8] sm:$0xff]   ;;  %726 = vmatpush3.bf16.msra.mxu0 %v840_v1  ;;  %v845_v6 = vld [vmem:[#allocation5 + $0xf0] sm:$0xff]   ;;  %v848_v9 = vld [vmem:[#allocation5 + $0x28] sm:$0xff]  }
  0x2b   :  { %v842_v3 = vld [vmem:[#allocation5 + $0xb8] sm:$0xff]   ;;  %747 = vmatprep.subr.bf16.mxu1 %v841_v2  ;;  %727 = vmatprep.subr.bf16.mxu0 %v843_v4  ;;  %v846_v7 = vld [vmem:[#allocation5 + $0xb0] sm:$0xff]   ;;  %v849_v10 = vld [vmem:[#allocation5 + $0xe8] sm:$0xff]  }
  0x2c   :  { %748 = vmatpush3.bf16.msra.mxu1 %v842_v3  ;;  %v850_v11 = vld [vmem:[#allocation5 + $0xa8] sm:$0xff]   ;;  %v851_v12 = vld [vmem:[#allocation5 + $0x60] sm:$0xff]   ;;  %v855_v16 = vld [vmem:[#allocation5 + $0x58] sm:$0xff]  }
  0x2d   :  { %749 = vmatprep.subr.bf16.mxu1 %v845_v6  ;;  %v852_v13 = vld [vmem:[#allocation5 + $0x20] sm:$0xff]   ;;  %v856_v17 = vld [vmem:[#allocation5 + $0x18] sm:$0xff]   ;;  %v859_v20 = vld [vmem:[#allocation5 + $0x50] sm:$0xff]  }
  0x2e   :  { %728 = vmatpush3.bf16.msra.mxu0 %v844_v5  ;;  %v853_v14 = vld [vmem:[#allocation5 + $0xe0] sm:$0xff]   ;;  %v857_v18 = vld [vmem:[#allocation5 + $0xd8] sm:$0xff]   ;;  %v860_v21 = vld [vmem:[#allocation5 + $0x10] sm:$0xff]  }
  0x2f   :  { %729 = vmatprep.subr.bf16.mxu0 %v847_v8  ;;  %v854_v15 = vld [vmem:[#allocation5 + $0xa0] sm:$0xff]   ;;  %v858_v19 = vld [vmem:[#allocation5 + $0x98] sm:$0xff]   ;;  %v861_v22 = vld [vmem:[#allocation5 + $0xd0] sm:$0xff]  }
  0x30   :  { %750 = vmatpush3.bf16.msra.mxu1 %v846_v7  ;;  %v862_v23 = vld [vmem:[#allocation5 + $0x90] sm:$0xff]   ;;  %v863_v24 = vld [vmem:[#allocation5 + $0x48] sm:$0xff]   ;;  %v867_v28 = vld [vmem:[#allocation5 + $0x40] sm:$0xff]  }
  0x31   :  { %751 = vmatprep.subr.bf16.mxu1 %v849_v10  ;;  %v864_v25 = vld [vmem:[#allocation5 + $0x8] sm:$0xff]   ;;  %v868_v29 = vld [vmem:[#allocation5] sm:$0xff]   ;;  %v64_v31 = vld [vmem:[#allocation2 + $0x8] sm:$0xff] }
  0x32   :  { %730 = vmatpush3.bf16.msra.mxu0 %v848_v9  ;;  %v865_v26 = vld [vmem:[#allocation5 + $0xc8] sm:$0xff]   ;;  %v869_v30 = vld [vmem:[#allocation5 + $0xc0] sm:$0xff]   ;;  %v63_v35 = vld [vmem:[#allocation2] sm:$0xff] }
  0x33   :  { %731 = vmatprep.subr.bf16.mxu0 %v851_v12  ;;  %v866_v27 = vld [vmem:[#allocation5 + $0x88] sm:$0xff]   ;;  %v69_v32 = vld [vmem:[#allocation2 + $0x30] sm:$0xff]  ;;  %v68_v37 = vld [vmem:[#allocation2 + $0x28] sm:$0xff] }
  0x34   :  { %752 = vmatpush3.bf16.msra.mxu1 %v850_v11  ;;  %v74_v33 = vpack.c.bf16 %v69_v32, %v64_v31  ;;  %v870_v34 = vld [vmem:[#allocation5 + $0x80] sm:$0xff]   ;;  %v66_v38 = vld [vmem:[#allocation2 + $0x18] sm:$0xff]  ;;  %v71_v39 = vld [vmem:[#allocation2 + $0x40] sm:$0xff]  ;;  %v73_v40 = vpack.c.bf16 %v68_v37, %v63_v35 }
  0x35   :  { %753 = vmatprep.subr.bf16.mxu1 %v853_v14  ;;  %v76_v41 = vpack.c.bf16 %v71_v39, %v66_v38  ;;  %v871_v42 = vld [vmem:[#allocation5 + $0x138] sm:$0xff]   ;;  %v65_v43 = vld [vmem:[#allocation2 + $0x10] sm:$0xff]  ;;  %v70_v44 = vld [vmem:[#allocation2 + $0x38] sm:$0xff] }
  0x36   :  { %732 = vmatpush3.bf16.msra.mxu0 %v852_v13  ;;  %437 = vmatprep.mubr.bf16.mxu0 %v74_v33  ;;  %v75_v45 = vpack.c.bf16 %v70_v44, %v65_v43  ;;  %v872_v46 = vld [vmem:[#allocation5 + $0x130] sm:$0xff]   ;;  %v873_v47 = vld [vmem:[#allocation5 + $0x128] sm:$0xff]   ;;  %v874_v48 = vld [vmem:[#allocation5 + $0x120] sm:$0xff]  }
  0x37   :  { %733 = vmatprep.subr.bf16.mxu0 %v855_v16  ;;  %478 = vmatprep.mubr.bf16.mxu1 %v76_v41  ;;  %v875_v49 = vld [vmem:[#allocation5 + $0x118] sm:$0xff]   ;;  %v876_v50 = vld [vmem:[#allocation5 + $0x110] sm:$0xff]   ;;  %v877_v51 = vld [vmem:[#allocation5 + $0x108] sm:$0xff]  }
  0x38   :  { %754 = vmatpush3.bf16.msra.mxu1 %v854_v15  ;;  %v878_v52 = vld [vmem:[#allocation5 + $0x100] sm:$0xff]   ;;  %v67_v53 = vld [vmem:[#allocation2 + $0x20] sm:$0xff]  ;;  %v72_v54 = vld [vmem:[#allocation2 + $0x48] sm:$0xff] }
  0x39   :  { %755 = vmatprep.subr.bf16.mxu1 %v857_v18  ;;  %v77_v55 = vpack.c.bf16 %v72_v54, %v67_v53  ;;  %v879_v56 = vld [vmem:[#allocation7 + $0x38] sm:$0xff]   ;;  %v880_v57 = vld [vmem:[#allocation7 + $0x30] sm:$0xff]   ;;  %v881_v58 = vld [vmem:[#allocation7 + $0x28] sm:$0xff]  }
  0x3a   :  { %734 = vmatpush3.bf16.msra.mxu0 %v856_v17  ;;  %v882_v59 = vld [vmem:[#allocation7 + $0x20] sm:$0xff]   ;;  %v883_v60 = vld [vmem:[#allocation7 + $0x18] sm:$0xff]   ;;  %v884_v61 = vld [vmem:[#allocation7 + $0x10] sm:$0xff]  }
  0x3b   :  { %735 = vmatprep.subr.bf16.mxu0 %v859_v20  ;;  %v885_v62 = vld [vmem:[#allocation7 + $0x8] sm:$0xff]   ;;  %v886_v63 = vld [vmem:[#allocation7] sm:$0xff]   ;;  %v675_v8 = vld [vmem:[%s1057_s2] ss:$0 sm:$0xff] }
  0x3c   :  { %756 = vmatpush3.bf16.msra.mxu1 %v858_v19 }
  0x3d   :  { %757 = vmatprep.subr.bf16.mxu1 %v861_v22 }
  0x3e   :  { %736 = vmatpush3.bf16.msra.mxu0 %v860_v21 }
  0x3f   :  { %737 = vmatprep.subr.bf16.mxu0 %v863_v24 }
  0x40   :  { %758 = vmatpush3.bf16.msra.mxu1 %v862_v23 }
  0x41   :  { %759 = vmatprep.subr.bf16.mxu1 %v865_v26  ;;  %v716_v26 = vld [vmem:[%s1059_s4] ss:$0 sm:$0xff]  ;;  %s662_s4 = sshll.u32 %s986_s12, 4  ;;  %s663_s4 = int_to_ptr.vmem [resolvable:$true] %s662_s4 }
  0x42   :  { %738 = vmatpush3.bf16.msra.mxu0 %v864_v25  ;;  %s951_s13 = scalar_lea.vmem %s663_s4, 256  ;;  %p956_p2 = scmp.lt.s32.totalorder %s663_s4, %s663_s4 }
  0x43   :  { %739 = vmatprep.subr.bf16.mxu0 %v867_v28  ;;  %p952_p1 = scmp.ne.s32.totalorder %s663_s4, %s951_s13  ;;  %p957_p3 = scmp.lt.s32.totalorder %s951_s13, %s951_s13 }
  0x44   :  { %760 = vmatpush3.bf16.msra.mxu1 %v866_v27 }
  0x45   :  { %761 = vmatprep.subr.bf16.mxu1 %v869_v30  ;;  %p958_p4 = por %p957_p3, %p956_p2 }
  0x46   :  { %740 = vmatpush3.bf16.msra.mxu0 %v868_v29 }
  0x47   :  { %787 = vmatprep.subr.bf16.mxu0 %v984_v36  ;;  %p959_p5 = pnand %p958_p4, %p952_p1 }
  0x48   :  { %762 = vmatpush3.bf16.msra.mxu1 %v870_v34 }
  0x49   :  { %807 = vmatprep.subr.bf16.mxu1 %v984_v36  ;;  %438 = vmatmul.mubr.bf16.vlgmr.msra.gmra.mxu0 %v73_v40 }
  0x4a   :  { %788 = vmatpush3.bf16.msra.mxu0 %v871_v42  ;;  %803 = vmatprep.mubr.msk.bf16.mxu0 %vm985_vm0, %v984_v36 }
  0x4b   :  { %479 = vmatmul.mubr.bf16.vlgmr.msra.gmra.mxu1 %v75_v45  ;;  %789 = vmatprep.subr.bf16.mxu0 %v984_v36 }
  0x4c   :  { %823 = vmatprep.mubr.msk.bf16.mxu1 %vm985_vm0, %v984_v36  ;;  %808 = vmatpush3.bf16.msra.mxu1 %v879_v56 }
  0x4d   :  { %809 = vmatprep.subr.bf16.mxu1 %v984_v36 }
  0x4e   :  { %790 = vmatpush3.bf16.msra.mxu0 %v872_v46 }
  0x4f   :  { %791 = vmatprep.subr.bf16.mxu0 %v984_v36 }
  0x50   :  { %810 = vmatpush3.bf16.msra.mxu1 %v880_v57 }
  0x51   :  { %811 = vmatprep.subr.bf16.mxu1 %v984_v36 }
  0x52   :  { %792 = vmatpush3.bf16.msra.mxu0 %v873_v47 }
  0x53   :  { %793 = vmatprep.subr.bf16.mxu0 %v984_v36 }
  0x54   :  { %812 = vmatpush3.bf16.msra.mxu1 %v881_v58 }
  0x55   :  { %813 = vmatprep.subr.bf16.mxu1 %v984_v36 }
  0x56   :  { %794 = vmatpush3.bf16.msra.mxu0 %v874_v48 }
  0x57   :  { %795 = vmatprep.subr.bf16.mxu0 %v984_v36 }
  0x58   :  { %814 = vmatpush3.bf16.msra.mxu1 %v882_v59 }
  0x59   :  { %815 = vmatprep.subr.bf16.mxu1 %v984_v36 }
  0x5a   :  { %796 = vmatpush3.bf16.msra.mxu0 %v875_v49 }
  0x5b   :  { %797 = vmatprep.subr.bf16.mxu0 %v984_v36 }
  0x5c   :  { %816 = vmatpush3.bf16.msra.mxu1 %v883_v60 }
  0x5d   :  { %817 = vmatprep.subr.bf16.mxu1 %v984_v36 }
  0x5e   :  { %798 = vmatpush3.bf16.msra.mxu0 %v876_v50 }
  0x5f   :  { %799 = vmatprep.subr.bf16.mxu0 %v984_v36 }
  0x60   :  { %818 = vmatpush3.bf16.msra.mxu1 %v884_v61 }
  0x61   :  { %819 = vmatprep.subr.bf16.mxu1 %v984_v36 }
  0x62   :  { %800 = vmatpush3.bf16.msra.mxu0 %v877_v51 }
  0x63   :  { %801 = vmatprep.subr.bf16.mxu0 %v984_v36 }
  0x64   :  { %820 = vmatpush3.bf16.msra.mxu1 %v885_v62 }
  0x65   :  { %821 = vmatprep.subr.bf16.mxu1 %v984_v36 }
  0x66   :  { %802 = vmatpush3.bf16.msra.mxu0 %v878_v52 }
  0x68   :  { %822 = vmatpush3.bf16.msra.mxu1 %v886_v63 }
  0x69   :  { %804 = vmatmul.mubr.bf16.vlgmr.msra.gmra.mxu0 %v77_v55 }
 0x109   :  { %v741_v0 = vpop.f32.mrf.mxu0 }
 0x10b   :  { %v742_v1 = vpop.f32.mrf.mxu0  ;;  %v763_v2 = vpop.f32.mrf.mxu1 }
 0x10c   :  { %v743_v7 = vadd.f32 %v742_v1, %v741_v0 }
 0x10d   :  { %v744_v3 = vpop.f32.mrf.mxu0  ;;  %v764_v4 = vpop.f32.mrf.mxu1 }
 0x10e   :  { %v440_v11 = vadd.f32 %v743_v7, %v675_v8  ;;  %v765_v12 = vadd.f32 %v764_v4, %v763_v2 }
 0x10f   :  { %v745_v5 = vpop.f32.mrf.mxu0  ;;  %v766_v6 = vpop.f32.mrf.mxu1 }
 0x110   :  { %v746_v9 = vadd.f32 %v745_v5, %v744_v3  ;;  %v481_v16 = vadd.f32 %v765_v12, %v440_v11 }
 0x111   :  { %v767_v10 = vpop.f32.mrf.mxu1 }
 0x112   :  { %v443_v13 = vadd.f32 %v746_v9, %v675_v8  ;;  %v768_v14 = vadd.f32 %v767_v10, %v766_v6 }
 0x114   :  { %v484_v19 = vadd.f32 %v768_v14, %v443_v13 }
 0x129   :  { %v521_v15 = vpop.f32.mrf.mxu0 }
 0x12a   :  { %v522_v18 = vadd.f32 %v521_v15, %v481_v16 }
 0x12b   :  { %v805_v17 = vpop.f32.mrf.mxu0 }
 0x12c   :  { %v528_v23 = vmax.f32 %v522_v18, 0.0 }
 0x12d   :  { %v524_v20 = vpop.f32.mrf.mxu0 }
 0x12e   :  { %v525_v21 = vadd.f32 %v524_v20, %v484_v19 }
 0x12f   :  { %v806_v22 = vpop.f32.mrf.mxu0 }
 0x130   :  { %v529_v24 = vmax.f32 %v525_v21, 0.0 }
 0x132   :  { %v530_v25 = vpack.c.bf16 %v529_v24, %v528_v23 }
 0x134   :  { %824 = vmatmul.mubr.bf16.vlgmr.msra.gmra.mxu1 %v530_v25 }
 0x1f4   :  { %v636_v27 = vpop.f32.mrf.mxu1 }
 0x1f5   :  { %v637_v28 = vadd.f32 %v716_v26, %v636_v27 }
 0x1f6   :  { %v825_v29 = vpop.f32.mrf.mxu1 }
 0x1f7   :  { %v643_v30 = vmul.f32 %v637_v28, %v637_v28 }
 0x1f8   :  { %v639_v31 = vpop.f32.mrf.mxu1 }
 0x1f9   :  { %v640_v32 = vadd.f32 %v716_v26, %v639_v31  ;;  %645 = vadd.xlane.f32.xlu0 %v643_v30 }
 0x1fa   :  { %v826_v33 = vpop.f32.mrf.mxu1 }
 0x1fb   :  { %v644_v34 = vmul.f32 %v640_v32, %v640_v32 }
 0x1fd   :  { %647 = vadd.xlane.f32.xlu0 %v644_v34 }
 0x282   :  { %v646_v35 = vpop.xlane.xlu0 %645 }
 0x283   :  { %v649_v36 = vmax.f32 %v646_v35, 1e-24 }
 0x285   :  { %887 = vrsqrt.f32 %v649_v36 }
 0x286   :  { %v648_v37 = vpop.xlane.xlu0 %647 }
 0x287   :  { %v650_v38 = vmax.f32 %v648_v37, 1e-24 }
 0x289   :  { %889 = vrsqrt.f32 %v650_v38 }
 0x292   :  { %v888_v39 = vpop.eup %887 }
 0x293   :  { %v653_v40 = vmul.f32 %v888_v39, %v637_v28 }
 0x295   :  { %655 = vst [vmem:[#allocation8] sm:$0xff] %v653_v40 }
 0x296   :  { %v890_v41 = vpop.eup %889 }
 0x297   :  { %v654_v42 = vmul.f32 %v890_v41, %v640_v32 }
 0x299   :  { %656 = vst [vmem:[#allocation8 + $0x8] sm:$0xff] %v654_v42 }
 0x29a   :  { %962 = shalt.err (!%p959_p5)
}
 0x29b   :  { %s987_s14 = smov 128   ;;  %s988_s15 = smov 8  }
 0x29c   :  { %668 = dma.vmem_to_hbm [thread:$0]  %s663_s4, 256, %s1060_s5, [#allocation4], %s987_s14, %s987_s14, %s988_s15  }
 0x29d   :  { %975 = dma.done.wait [#allocation4], 256  }
 0x29e   :  { %976 = vsyncadd [#allocation4], 4294967040 }
 0x29f   :  { %672 = vsyncpa [#allocation3], 1 }
 0x2a0   :  { %673 = vsyncpa [#allocation6], 1 }
 0x2a1   :  { %674 = vsyncpa [#allocation4], 1 }

</bundles_post_ra>
